<compile_context>
chip_gen: v7x
topology: tpu7x:2x2x1
jax: 0.10.0
libtpu: 0.0.40
codegen_flags: <defaults>
</compile_context>

<pallas_src>
import numpy as np
import jax
import jax.numpy as jnp
from jax import lax
from jax.experimental import pallas as pl
from jax.experimental.pallas import tpu as pltpu


def _make_self_att_kernel(feature: int):
    F = feature

    def self_att_kernel(x_ref, wqkv_ref, bqkv_ref, out_ref, scores_ref):
        x = x_ref[...]                                            # (S, F)

        # Fused Q/K/V projection: one MXU push + one bias broadcast.
        # The 1/sqrt(d_k) scale is already folded into the Q columns.
        qkv = jnp.dot(x, wqkv_ref[...],
                      preferred_element_type=jnp.float32) + bqkv_ref[...]  # (S, 3F)

        q = qkv[:, 0 * F:1 * F]
        k = qkv[:, 1 * F:2 * F]
        v = qkv[:, 2 * F:3 * F]

        # scores = softmax(q_scaled @ k^T, axis=-1); contract the last dims of
        # both operands so no explicit transpose / VMEM copy of k is needed.
        s = lax.dot_general(q, k, (((1,), (1,)), ((), ())),
                            preferred_element_type=jnp.float32)   # (S, S)
        s_max = jnp.max(s, axis=-1, keepdims=True)
        p = jnp.exp(s - s_max)
        denom = jnp.sum(p, axis=-1, keepdims=True)
        # approx=False keeps the 1e-5 tolerance; approx=True for production.
        scores = p * pl.reciprocal(denom, approx=False)

        scores_ref[...] = scores
        out_ref[...] = jnp.dot(scores, v, preferred_element_type=jnp.float32)

    return self_att_kernel


def self_att(embs, wq, bq, wk, bk, wv, bv):
    """Self-attention forward matching torch Self_Att.forward.

    embs : (S, F) or (B, S, F) f32.
    wq/wk/wv : (F, F) in torch Linear layout (out, in).
    bq/bk/bv : (F,).
    Returns (result, scores), same leading-batch convention as embs.
    """
    squeeze = embs.ndim == 2
    if squeeze:
        embs = embs[None]                        # (1, S, F)
    B, S, F = embs.shape
    inv_sqrt_dk = jnp.float32(1.0 / float(np.sqrt(F)))

    # Fuse weights: x @ W.T + b == x @ W_t + b with W_t = (F_in, F_out).
    # Fold the attention scale into the Q columns (done once per call on
    # (F, F) + (F,) elements; fuses with the concat in XLA).
    w_qkv = jnp.concatenate([wq.T * inv_sqrt_dk, wk.T, wv.T], axis=1)   # (F, 3F)
    b_qkv = jnp.concatenate([bq * inv_sqrt_dk, bk, bv]).reshape(1, 3 * F)

    out, scores = pl.pallas_call(
        _make_self_att_kernel(F),
        grid=(B,),
        in_specs=[
            pl.BlockSpec((None, S, F), lambda b: (b, 0, 0)),     # per-seq tile
            pl.BlockSpec((F, 3 * F), lambda b: (0, 0)),          # shared weights
            pl.BlockSpec((1, 3 * F), lambda b: (0, 0)),          # shared bias
        ],
        out_specs=(
            pl.BlockSpec((None, S, F), lambda b: (b, 0, 0)),
            pl.BlockSpec((None, S, S), lambda b: (b, 0, 0)),
        ),
        out_shape=(
            jax.ShapeDtypeStruct((B, S, F), jnp.float32),        # result
            jax.ShapeDtypeStruct((B, S, S), jnp.float32),        # scores
        ),
        compiler_params=pltpu.CompilerParams(
            dimension_semantics=("parallel",)),
    )(embs, w_qkv, b_qkv)

    if squeeze:
        out, scores = out[0], scores[0]
    return out, scores


def _reference(embs, wq, bq, wk, bk, wv, bv):
    F = embs.shape[-1]
    q = embs @ wq.T + bq
    k = embs @ wk.T + bk
    v = embs @ wv.T + bv
    s = jnp.einsum('...qd,...kd->...qk', q, k) / np.sqrt(F)
    s = jax.nn.softmax(s, axis=-1)
    return jnp.einsum('...qk,...kd->...qd', s, v), s


if __name__ == "__main__":
    key = jax.random.PRNGKey(0)
    S, F, B = 8, 32, 2   # seq=8, feature=32, demo batch=2

    ks = jax.random.split(key, 8)
    bound = 1.0 / np.sqrt(F)
    embs = jax.random.normal(ks[0], (S, F), dtype=jnp.float32)
    wq = jax.random.uniform(ks[1], (F, F), jnp.float32, -bound, bound)
    bq = jax.random.uniform(ks[2], (F,), jnp.float32, -bound, bound)
    wk = jax.random.uniform(ks[3], (F, F), jnp.float32, -bound, bound)
    bk = jax.random.uniform(ks[4], (F,), jnp.float32, -bound, bound)
    wv = jax.random.uniform(ks[5], (F, F), jnp.float32, -bound, bound)
    bv = jax.random.uniform(ks[6], (F,), jnp.float32, -bound, bound)
    embs_b = jax.random.normal(ks[7], (B, S, F), dtype=jnp.float32)

    fn = jax.jit(self_att)

    # Module-consistent 2-D case (matches PyTorch Self_Att.forward).
    out, scores = fn(embs, wq, bq, wk, bk, wv, bv)
    jax.block_until_ready((out, scores))
    ref_out, ref_scores = _reference(embs, wq, bq, wk, bk, wv, bv)
    np.testing.assert_allclose(np.asarray(out), np.asarray(ref_out),
                               rtol=1e-5, atol=1e-5)
    np.testing.assert_allclose(np.asarray(scores), np.asarray(ref_scores),
                               rtol=1e-5, atol=1e-5)

    # Batched case exercising the parallel grid axis.
    out_b, scores_b = fn(embs_b, wq, bq, wk, bk, wv, bv)
    jax.block_until_ready((out_b, scores_b))
    ref_out_b, ref_scores_b = _reference(embs_b, wq, bq, wk, bk, wv, bv)
    np.testing.assert_allclose(np.asarray(out_b), np.asarray(ref_out_b),
                               rtol=1e-5, atol=1e-5)
    np.testing.assert_allclose(np.asarray(scores_b), np.asarray(ref_scores_b),
                               rtol=1e-5, atol=1e-5)

    print("KERNEL_OK")
</pallas_src>

<mosaic_0001>
module attributes {stable_mosaic.version = 11 : i64} {
  func.func @self_att_kernel(%arg0: i32, %arg1: memref<1x8x32xf32, #tpu.memory_space<vmem>>, %arg2: memref<32x96xf32, #tpu.memory_space<vmem>>, %arg3: memref<1x96xf32, #tpu.memory_space<vmem>>, %arg4: memref<1x8x32xf32, #tpu.memory_space<vmem>>, %arg5: memref<1x8x8xf32, #tpu.memory_space<vmem>>) attributes {dimension_semantics = [#tpu.dimension_semantics<parallel>], iteration_bounds = array<i64: 1>, scalar_prefetch = 0 : i64, scratch_operands = 0 : i64, tpu.core_type = #tpu.core_type<tc>, window_params = [{transform_indices = @transform_0, window_bounds = array<i64: 1, 8, 32>}, {pipeline_mode = #tpu.pipeline_mode<synchronous>, transform_indices = @transform_1, window_bounds = array<i64: 32, 96>}, {pipeline_mode = #tpu.pipeline_mode<synchronous>, transform_indices = @transform_2, window_bounds = array<i64: 1, 96>}, {transform_indices = @transform_3, window_bounds = array<i64: 1, 8, 32>}, {transform_indices = @transform_4, window_bounds = array<i64: 1, 8, 8>}]} {
    %c0 = arith.constant 0 : index
    %c0_0 = arith.constant 0 : index
    %c0_1 = arith.constant 0 : index
    %0 = vector.load %arg1[%c0, %c0_0, %c0_1] : memref<1x8x32xf32, #tpu.memory_space<vmem>>, vector<1x8x32xf32>
    %1 = vector.shape_cast %0 : vector<1x8x32xf32> to vector<8x32xf32>
    %c0_2 = arith.constant 0 : index
    %c0_3 = arith.constant 0 : index
    %2 = vector.load %arg2[%c0_2, %c0_3] : memref<32x96xf32, #tpu.memory_space<vmem>>, vector<32x96xf32>
    %cst = arith.constant dense<0.000000e+00> : vector<8x96xf32>
    %3 = tpu.matmul %1, %2, %cst {dimension_numbers = #tpu.dot_dimension_numbers<[1], [0], [0], [1], [0, 0, 1, 1], [], []>} : vector<8x32xf32>, vector<32x96xf32>, vector<8x96xf32> -> vector<8x96xf32>
    %c0_4 = arith.constant 0 : index
    %c0_5 = arith.constant 0 : index
    %4 = vector.load %arg3[%c0_4, %c0_5] : memref<1x96xf32, #tpu.memory_space<vmem>>, vector<1x96xf32>
    %5 = vector.broadcast %4 : vector<1x96xf32> to vector<8x96xf32>
    %6 = arith.addf %3, %5 : vector<8x96xf32>
    %7 = vector.extract_strided_slice %6 {offsets = [0, 0], sizes = [8, 32], strides = [1, 1]} : vector<8x96xf32> to vector<8x32xf32>
    %8 = vector.extract_strided_slice %6 {offsets = [0, 32], sizes = [8, 32], strides = [1, 1]} : vector<8x96xf32> to vector<8x32xf32>
    %9 = vector.extract_strided_slice %6 {offsets = [0, 64], sizes = [8, 32], strides = [1, 1]} : vector<8x96xf32> to vector<8x32xf32>
    %cst_6 = arith.constant dense<0.000000e+00> : vector<8x8xf32>
    %10 = tpu.matmul %7, %8, %cst_6 {dimension_numbers = #tpu.dot_dimension_numbers<[1], [1], [0], [0], [0, 0, 1, 0], [], []>} : vector<8x32xf32>, vector<8x32xf32>, vector<8x8xf32> -> vector<8x8xf32>
    %cst_7 = arith.constant dense<0xFF800000> : vector<8xf32>
    %11 = vector.multi_reduction <maximumf>, %10, %cst_7 [1] : vector<8x8xf32> to vector<8xf32>
    %12 = vector.shape_cast %11 : vector<8xf32> to vector<8x1xf32>
    %13 = vector.broadcast %12 : vector<8x1xf32> to vector<8x8xf32>
    %14 = arith.subf %10, %13 : vector<8x8xf32>
    %15 = math.exp %14 : vector<8x8xf32>
    %cst_8 = arith.constant dense<0.000000e+00> : vector<8xf32>
    %16 = vector.multi_reduction <add>, %15, %cst_8 [1] : vector<8x8xf32> to vector<8xf32>
    %17 = vector.shape_cast %16 : vector<8xf32> to vector<8x1xf32>
    %18 = tpu.reciprocal %17 : vector<8x1xf32> -> vector<8x1xf32>
    %19 = vector.broadcast %18 : vector<8x1xf32> to vector<8x8xf32>
    %20 = arith.mulf %15, %19 : vector<8x8xf32>
    %c0_9 = arith.constant 0 : index
    %c0_10 = arith.constant 0 : index
    %c0_11 = arith.constant 0 : index
    %21 = vector.load %arg5[%c0_9, %c0_10, %c0_11] : memref<1x8x8xf32, #tpu.memory_space<vmem>>, vector<1x8x8xf32>
    %22 = vector.shape_cast %21 : vector<1x8x8xf32> to vector<8x8xf32>
    %23 = vector.shape_cast %20 : vector<8x8xf32> to vector<1x8x8xf32>
    tpu.vector_store %arg5[%c0_9, %c0_10, %c0_11], %23 {strides = array<i32>} : memref<1x8x8xf32, #tpu.memory_space<vmem>>, vector<1x8x8xf32>,
    %cst_12 = arith.constant dense<0.000000e+00> : vector<8x32xf32>
    %24 = tpu.matmul %20, %9, %cst_12 {dimension_numbers = #tpu.dot_dimension_numbers<[1], [0], [0], [1], [0, 0, 1, 1], [], []>} : vector<8x8xf32>, vector<8x32xf32>, vector<8x32xf32> -> vector<8x32xf32>
    %c0_13 = arith.constant 0 : index
    %c0_14 = arith.constant 0 : index
    %c0_15 = arith.constant 0 : index
    %25 = vector.load %arg4[%c0_13, %c0_14, %c0_15] : memref<1x8x32xf32, #tpu.memory_space<vmem>>, vector<1x8x32xf32>
    %26 = vector.shape_cast %25 : vector<1x8x32xf32> to vector<8x32xf32>
    %27 = vector.shape_cast %24 : vector<8x32xf32> to vector<1x8x32xf32>
    tpu.vector_store %arg4[%c0_13, %c0_14, %c0_15], %27 {strides = array<i32>} : memref<1x8x32xf32, #tpu.memory_space<vmem>>, vector<1x8x32xf32>,
    return
  }
  func.func @transform_0(%arg0: i32) -> (i32, i32, i32) {
    %c0_i32 = arith.constant 0 : i32
    %c0_i32_0 = arith.constant 0 : i32
    %c0_i32_1 = arith.constant 0 : i32
    return %arg0, %c0_i32, %c0_i32_0 : i32, i32, i32
  }
  func.func @transform_1(%arg0: i32) -> (i32, i32) {
    %c0_i32 = arith.constant 0 : i32
    %c0_i32_0 = arith.constant 0 : i32
    %c0_i32_1 = arith.constant 0 : i32
    return %c0_i32, %c0_i32_0 : i32, i32
  }
  func.func @transform_2(%arg0: i32) -> (i32, i32) {
    %c0_i32 = arith.constant 0 : i32
    %c0_i32_0 = arith.constant 0 : i32
    %c0_i32_1 = arith.constant 0 : i32
    return %c0_i32, %c0_i32_0 : i32, i32
  }
  func.func @transform_3(%arg0: i32) -> (i32, i32, i32) {
    %c0_i32 = arith.constant 0 : i32
    %c0_i32_0 = arith.constant 0 : i32
    %c0_i32_1 = arith.constant 0 : i32
    return %arg0, %c0_i32, %c0_i32_0 : i32, i32, i32
  }
  func.func @transform_4(%arg0: i32) -> (i32, i32, i32) {
    %c0_i32 = arith.constant 0 : i32
    %c0_i32_0 = arith.constant 0 : i32
    %c0_i32_1 = arith.constant 0 : i32
    return %arg0, %c0_i32, %c0_i32_0 : i32, i32, i32
  }
}

</mosaic_0001>

<bundles_post_ra>
// kernel: self_att.1
= control target key start
LH: loop header
LB: loop body
LE: loop exit
PB: predicated region body
PF: predicated region fallthrough
CT: control target
= control target key end

     0   :  { %10 = vsyncpa [#allocation3], 0  ;;  %v399_v3 = vmov 0.0|0.0   ;;  %vm400_vm0 = vmmov 0   ;;  %v401_v6 = vmov 0.0   ;;  %s484_s0 = inlined_call_operand.vmem [shape: f32[1,8,32], index: 0, kind: input, shape index: {}]   ;;  %s485_s1 = inlined_call_operand.vmem [shape: f32[32,96], index: 1, kind: input, shape index: {}]   ;;  %s486_s2 = inlined_call_operand.vmem [shape: f32[1,96], index: 2, kind: input, shape index: {}]   ;;  %s487_s3 = inlined_call_operand.hbm [shape: f32[1,8,32], index: 3, kind: output, shape index: {0}]   ;;  %s488_s4 = inlined_call_operand.hbm [shape: f32[1,8,8], index: 4, kind: output, shape index: {1}]  }
   0x1   :  { %v19_v0 = vld [vmem:[%s485_s1] sm:$0xff]  ;;  %v20_v1 = vld [vmem:[%s485_s1 + $0x8] sm:$0xff]  ;;  %v21_v2 = vld [vmem:[%s485_s1 + $0x10] sm:$0xff]  ;;  %334 = vmatprep.subr.bf16.mxu0 %v399_v3  ;;  %321 = vmatprep.mubr.msk.f32.mxu0 %vm400_vm0, %v401_v6 }
   0x2   :  { %v335_v4 = vpack.c.bf16 %v20_v1, %v19_v0  ;;  %v22_v5 = vld [vmem:[%s485_s1 + $0x18] sm:$0xff]  ;;  %324 = vmatprep.subr.mxu1 %v401_v6  ;;  %326 = vmatprep.mubr.msk.f32.mxu1 %vm400_vm0, %v401_v6 }
   0x3   :  { %11 = vsyncpa [#allocation5], 0  ;;  %v338_v7 = vpack.c.bf16 %v22_v5, %v21_v2  ;;  %v18_v8 = vld [vmem:[%s484_s0] sm:$0xff]  ;;  %vm30_vm1 = vcmask 261120   ;;  %s402_s26 = smov 96   ;;  %vm181_vm2 = vcmask 64512  }
   0x4   :  { %336 = vmatpush3.bf16.msra.mxu0 %v335_v4  ;;  %v299_v9 = vld [vmem:[%s486_s2] ss:$0 sm:$0xff]  ;;  %s403_s0 = smov 64   ;;  %s404_s2 = smov [#allocation4]  }
   0x5   :  { %337 = vmatprep.subr.bf16.mxu0 %v399_v3  ;;  %s287_s27 = sshll.u32 %s404_s2, 4  ;;  %s288_s27 = int_to_ptr.vmem [resolvable:$true] %s287_s27 }
   0x6   :  { %s351_s28 = scalar_lea.vmem %s288_s27, 128  ;;  %p356_p1 = scmp.lt.s32.totalorder %s288_s27, %s288_s27 }
   0x7   :  { %p352_p0 = scmp.ne.s32.totalorder %s288_s27, %s351_s28  ;;  %p357_p2 = scmp.lt.s32.totalorder %s351_s28, %s351_s28 }
   0x8   :  { %339 = vmatpush3.bf16.msra.mxu0 %v338_v7 }
   0x9   :  { %p358_p3 = por %p357_p2, %p356_p1 }
   0xb   :  { %322 = vmatmul.mubr.msk.f32.vlgmr.msra.gmra.mrb[0].mxu0 %vm30_vm1, %v18_v8  ;;  %p359_p4 = pnand %p358_p3, %p352_p0 }
  0xde   :  { %v100_v10 = vpop.f32.mrb[0].mxu0 }
  0xdf   :  { %v101_v11 = vadd.f32 %v299_v9, %v100_v10  ;;  %v323_v12 = vpop.f32.mrb[1].mxu0 }
  0xe1   :  { %105 = vrot.lane.b32.xlu0 %v101_v11, %s402_s26 }
 0x153   :  { %v106_v13 = vpop.permute.xlu0 %105 }
 0x154   :  { %325 = vmatpush3.xpose.msk.msra.mxu1 %vm30_vm1, %v106_v13 }
 0x155   :  { %329 = vmatprep.subr.mxu1 %v401_v6 }
 0x157   :  { %327 = vmatmul.mubr.msk.f32.vlgmr.msra.gmra.mrb[0].mxu1 %vm30_vm1, %v101_v11 }
 0x158   :  { %331 = vmatprep.mubr.msk.f32.mxu1 %vm400_vm0, %v401_v6 }
 0x22a   :  { %v177_v14 = vpop.f32.mrb[0].mxu1 }
 0x22b   :  { %v328_v15 = vpop.f32.mrb[1].mxu1  ;;  %v182_v16 = vsel %vm181_vm2, %v177_v14, -inf }
 0x22c   :  { %183 = vmax.xlane.f32.xlu0 %v182_v16 }
 0x2b9   :  { %v184_v17 = vpop.xlane.xlu0 %183 }
 0x2ba   :  { %v185_v18 = vsub.f32 %v177_v14, %v184_v17 }
 0x2bc   :  { %v186_v19 = vmul.f32 1.442695, %v185_v18 }
 0x2be   :  { %347 = vpow2.f32 %v186_v19 }
 0x2c8   :  { %v348_v20 = vpop.eup %347 }
 0x2c9   :  { %v188_v21 = vsel %vm181_vm2, %v348_v20, 0.0 }
 0x2ca   :  { %189 = vadd.xlane.f32.xlu1 %v188_v21 }
 0x2db   :  { %194 = vrot.lane.b32.xlu1 %v101_v11, %s403_s0 }
 0x357   :  { %v190_v22 = vpop.xlane.xlu1 %189 }
 0x358   :  { %349 = vrcp.f32 %v190_v22 }
 0x35b   :  { %v195_v23 = vpop.permute.xlu1 %194 }
 0x35c   :  { %330 = vmatpush3.msra.mxu1 %v195_v23 }
 0x362   :  { %v350_v24 = vpop.eup %349 }
 0x363   :  { %v192_v25 = vmul.f32 %v350_v24, %v348_v20 }
 0x365   :  { %193 = vst.msk [vmem:[#allocation4] sm:$0xff] %vm181_vm2, %v192_v25  ;;  %332 = vmatmul.mubr.msk.f32.vlgmr.msra.gmra.mrb[2].mxu1 %vm181_vm2, %v192_v25 }
 0x366   :  { %362 = shalt.err (!%p359_p4)
}
 0x367   :  { %s363_s5 = scalar_lea.hbm %s488_s4, 128 }
 0x368   :  { %p364_p5 = scmp.ne.s32.totalorder %s488_s4, %s363_s5  ;;  %p367_p6 = scmp.lt.u32.totalorder %s363_s5, %s488_s4 }
 0x36a   :  { %p369_p7 = pnand %p367_p6, %p364_p5 }
 0x36c   :  { %372 = shalt.err (!%p369_p7)
}
 0x36d   :  { %290 = dma.vmem_to_hbm [thread:$0]  %s288_s27, 128, %s488_s4, [#allocation5]  }
 0x36e   :  { %s405_s12 = smov [#allocation2]  }
 0x36f   :  { %s277_s13 = sshll.u32 %s405_s12, 4  ;;  %s278_s13 = int_to_ptr.vmem [resolvable:$true] %s277_s13 }
 0x370   :  { %s373_s14 = scalar_lea.vmem %s278_s13, 128  ;;  %p378_p9 = scmp.lt.s32.totalorder %s278_s13, %s278_s13 }
 0x371   :  { %p374_p8 = scmp.ne.s32.totalorder %s278_s13, %s373_s14  ;;  %p379_p10 = scmp.lt.s32.totalorder %s373_s14, %s373_s14 }
 0x373   :  { %p380_p11 = por %p379_p10, %p378_p9 }
 0x375   :  { %p381_p12 = pnand %p380_p11, %p374_p8 }
 0x438   :  { %v266_v26 = vpop.f32.mrb[2].mxu1 }
 0x439   :  { %270 = vst.msk [vmem:[#allocation2] sm:$0xff] %vm30_vm1, %v266_v26  ;;  %v333_v27 = vpop.f32.mrb[3].mxu1 }
 0x43a   :  { %384 = shalt.err (!%p381_p12)
}
 0x43b   :  { %s385_s17 = scalar_lea.hbm %s487_s3, 128 }
 0x43c   :  { %p386_p13 = scmp.ne.s32.totalorder %s487_s3, %s385_s17  ;;  %p389_p0 = scmp.lt.u32.totalorder %s385_s17, %s487_s3 }
 0x43e   :  { %p391_p1 = pnand %p389_p0, %p386_p13 }
 0x440   :  { %394 = shalt.err (!%p391_p1)
}
 0x441   :  { %280 = dma.vmem_to_hbm [thread:$0]  %s278_s13, 128, %s487_s3, [#allocation3]  }
 0x442   :  { %395 = dma.done.wait [#allocation3], 128  }
 0x443   :  { %396 = vsyncadd [#allocation3], 4294967168 }
 0x444   :  { %397 = dma.done.wait [#allocation5], 128  }
 0x445   :  { %398 = vsyncadd [#allocation5], 4294967168 }
 0x446   :  { %297 = vsyncpa [#allocation3], 1 }
 0x447   :  { %298 = vsyncpa [#allocation5], 1 }

</bundles_post_ra>
